<compile_context>
chip_gen: v5e
topology: v5e:2x2
jax: 0.10.0
libtpu: 0.0.40
codegen_flags: <defaults>
</compile_context>

<pallas_src>
import functools

import jax
import jax.numpy as jnp
from jax.experimental import pallas as pl
from jax.experimental.pallas import tpu as pltpu


def contrastive_head_kernel(h_ref, m_ref, w_ref, b_ref, o_ref,
                            pooled_acc, count_acc, len_acc):
    """Grid = (B/Bt, S/St).  Accumulate masked sum over S, project+sigmoid on last S tile.

    h_ref : (Bt, St, D)  hidden-state tile (any float dtype; accumulated in f32)
    m_ref : (Bt, St)     mask tile (0 = padding)
    w_ref : (D, D)       nn.Linear weight, PyTorch layout (out, in) -- NOT transposed
    b_ref : (1, D)       bias
    o_ref : (Bt, D)      output tile
    pooled_acc : (Bt, D) f32 scratch   sum_s ind_s * h_s
    count_acc  : (Bt, 1) f32 scratch   sum_s ind_s          (number of kept tokens)
    len_acc    : (Bt, 1) f32 scratch   sum_s mask_s          (PyTorch divides by this)
    """
    s_idx = pl.program_id(1)

    @pl.when(s_idx == 0)
    def _init():
        pooled_acc[...] = jnp.zeros_like(pooled_acc)
        count_acc[...] = jnp.zeros_like(count_acc)
        len_acc[...] = jnp.zeros_like(len_acc)

    m = m_ref[...].astype(jnp.float32)                     # (Bt, St)
    ind = (m != 0).astype(jnp.float32)                     # masked_fill(mask == 0, 0) indicator
    h = h_ref[...].astype(jnp.float32)                     # (Bt, St, D)

    # Masked sum-pool over the sequence tile (VPU multiply + sublane reduce).
    pooled_acc[...] += jnp.sum(h * ind[:, :, None], axis=1)
    count_acc[...] += jnp.sum(ind, axis=1, keepdims=True)
    len_acc[...] += jnp.sum(m, axis=1, keepdims=True)

    @pl.when(s_idx == pl.num_programs(1) - 1)
    def _finalize():
        # One small (Bt, D) @ (D, D)^T matmul on the MXU; contract weight's 2nd (in) axis
        # so no host-side transpose of the weight is ever needed.
        proj = jax.lax.dot_general(
            pooled_acc[...], w_ref[...].astype(jnp.float32),
            dimension_numbers=(((1,), (1,)), ((), ())),
            preferred_element_type=jnp.float32)            # (Bt, D)
        inv_len = 1.0 / len_acc[...]                       # computed once per batch row
        out = (proj + count_acc[...] * b_ref[...].astype(jnp.float32)) * inv_len
        o_ref[...] = jax.nn.sigmoid(out).astype(o_ref.dtype)


def _default_block_b(B):
    # Batch tile: multiple of 8 when possible (sublane granularity for the 2-D mask/output
    # blocks); otherwise keep the full batch.
    return 8 if (B % 8 == 0 and B > 8) else B


def _default_block_s(S, block_b, D, itemsize, budget_bytes=2 * 1024 * 1024):
    # Sequence tile: full S if it fits the per-buffer VMEM budget, else the largest multiple
    # of 128 (lane granularity of the mask block) that divides S and fits the budget.
    if block_b * S * D * itemsize <= budget_bytes:
        return S
    cand = (budget_bytes // max(block_b * D * itemsize, 1)) // 128 * 128
    cand = max(cand, 128)
    while cand > 128 and S % cand != 0:
        cand -= 128
    return cand if S % cand == 0 else S


@functools.partial(jax.jit, static_argnames=("block_b", "block_s"))
def contrastive_head_avg(hidden_states, masks, weight, bias, *, block_b=None, block_s=None):
    """hidden_states: (B,S,D); masks: (B,S) (0 = pad); weight: (D,D) PyTorch (out,in); bias: (D,)."""
    B, S, D = hidden_states.shape
    itemsize = jnp.dtype(hidden_states.dtype).itemsize

    if block_b is None:
        block_b = _default_block_b(B)
    if block_s is None:
        block_s = _default_block_s(S, block_b, D, itemsize)

    # Tiling legality (kept simple: no ragged edge blocks).
    assert B % block_b == 0 and S % block_s == 0
    if block_b < B:
        assert block_b % 8 == 0
    if block_s < S:
        assert block_s % 128 == 0

    grid = (B // block_b, S // block_s)
    b2d = bias.reshape(1, D)

    return pl.pallas_call(
        contrastive_head_kernel,
        out_shape=jax.ShapeDtypeStruct((B, D), hidden_states.dtype),
        grid_spec=pltpu.PrefetchScalarGridSpec(
            num_scalar_prefetch=0,
            grid=grid,
            in_specs=[
                pl.BlockSpec((block_b, block_s, D), lambda b, s: (b, s, 0)),  # h tile
                pl.BlockSpec((block_b, block_s), lambda b, s: (b, s)),        # mask tile
                pl.BlockSpec((D, D), lambda b, s: (0, 0)),                    # weight (resident)
                pl.BlockSpec((1, D), lambda b, s: (0, 0)),                    # bias   (resident)
            ],
            out_specs=pl.BlockSpec((block_b, D), lambda b, s: (b, 0)),
            scratch_shapes=[
                pltpu.VMEM((block_b, D), jnp.float32),   # pooled sum
                pltpu.VMEM((block_b, 1), jnp.float32),   # token count
                pltpu.VMEM((block_b, 1), jnp.float32),   # sum(mask) length
            ],
        ),
        compiler_params=pltpu.CompilerParams(
            dimension_semantics=("parallel", "arbitrary"),
            # Explicit, generation-safe scoped VMEM limit (v7x only has 64 MiB physical).
            vmem_limit_bytes=32 * 1024 * 1024,
        ),
    )(hidden_states, masks, weight, b2d)


def _reference(hidden_states, masks, weight, bias):
    """Pure-JAX reference mirroring the PyTorch forward exactly (project -> mask -> avg -> sigmoid)."""
    proj = jnp.einsum("bsd,od->bso", hidden_states, weight) + bias
    masked = jnp.where(masks[:, :, None] == 0, 0.0, proj)
    length = jnp.sum(masks, axis=1, keepdims=True)
    avg = jnp.sum(masked, axis=1) / length
    return jax.nn.sigmoid(avg)


def _run_case(key, B, S, D, block_b=None, block_s=None):
    k_h, k_w, k_b, k_l = jax.random.split(key, 4)
    hidden_states = jax.random.normal(k_h, (B, S, D), dtype=jnp.float32)
    lengths = jax.random.randint(k_l, (B,), minval=1, maxval=S + 1)
    masks = (jnp.arange(S)[None, :] < lengths[:, None]).astype(jnp.float32)

    bound = 1.0 / (D ** 0.5)
    weight = jax.random.uniform(k_w, (D, D), minval=-bound, maxval=bound, dtype=jnp.float32)
    bias = jax.random.uniform(k_b, (D,), minval=-bound, maxval=bound, dtype=jnp.float32)

    out = contrastive_head_avg(hidden_states, masks, weight, bias,
                               block_b=block_b, block_s=block_s)
    out = jax.block_until_ready(out)

    ref = _reference(hidden_states, masks, weight, bias)
    assert out.shape == (B, D)
    err = jnp.max(jnp.abs(out - ref))
    assert jnp.allclose(out, ref, atol=2e-5, rtol=2e-5), f"max abs err = {err}"


if __name__ == "__main__":
    # note: nn.Dropout is identity in eval mode; omitted from the kernel (inference semantics).
    key = jax.random.PRNGKey(0)
    k1, k2 = jax.random.split(key)

    # Small shape from the module spec (single block, grid = (1, 1)).
    _run_case(k1, B=2, S=8, D=32)

    # Larger shape exercising the tiled / pipelined accumulator path (grid = (2, 2)).
    _run_case(k2, B=16, S=256, D=128, block_b=8, block_s=128)

    print("KERNEL_OK")
</pallas_src>

<mosaic_0001>
module attributes {stable_mosaic.version = 11 : i64} {
  func.func @contrastive_head_kernel(%arg0: i32, %arg1: i32, %arg2: memref<2x8x32xf32, #tpu.memory_space<vmem>>, %arg3: memref<2x8xf32, #tpu.memory_space<vmem>>, %arg4: memref<32x32xf32, #tpu.memory_space<vmem>>, %arg5: memref<1x32xf32, #tpu.memory_space<vmem>>, %arg6: memref<2x32xf32, #tpu.memory_space<vmem>>, %arg7: memref<2x32xf32, #tpu.memory_space<vmem>>, %arg8: memref<2x1xf32, #tpu.memory_space<vmem>>, %arg9: memref<2x1xf32, #tpu.memory_space<vmem>>) attributes {dimension_semantics = [#tpu.dimension_semantics<parallel>, #tpu.dimension_semantics<arbitrary>], iteration_bounds = array<i64: 1, 1>, scalar_prefetch = 0 : i64, scratch_operands = 3 : i64, tpu.core_type = #tpu.core_type<tc>, window_params = [{transform_indices = @transform_0, window_bounds = array<i64: 2, 8, 32>}, {transform_indices = @transform_1, window_bounds = array<i64: 2, 8>}, {pipeline_mode = #tpu.pipeline_mode<synchronous>, transform_indices = @transform_2, window_bounds = array<i64: 32, 32>}, {pipeline_mode = #tpu.pipeline_mode<synchronous>, transform_indices = @transform_3, window_bounds = array<i64: 1, 32>}, {transform_indices = @transform_4, window_bounds = array<i64: 2, 32>}]} {
    %c0_i32 = arith.constant 0 : i32
    %0 = arith.cmpi eq, %arg1, %c0_i32 : i32
    %1 = arith.extui %0 : i1 to i32
    %c0_i32_0 = arith.constant 0 : i32
    %2 = arith.cmpi ne, %1, %c0_i32_0 : i32
    scf.if %2 {
      %cst_22 = arith.constant 0.000000e+00 : f32
      %29 = vector.broadcast %cst_22 : f32 to vector<2x32xf32>
      %c0_23 = arith.constant 0 : index
      %c0_24 = arith.constant 0 : index
      %30 = vector.load %arg7[%c0_23, %c0_24] : memref<2x32xf32, #tpu.memory_space<vmem>>, vector<2x32xf32>
      tpu.vector_store %arg7[%c0_23, %c0_24], %29 {strides = array<i32>} : memref<2x32xf32, #tpu.memory_space<vmem>>, vector<2x32xf32>,
      %cst_25 = arith.constant 0.000000e+00 : f32
      %31 = vector.broadcast %cst_25 : f32 to vector<2x1xf32>
      %c0_26 = arith.constant 0 : index
      %c0_27 = arith.constant 0 : index
      %32 = vector.load %arg8[%c0_26, %c0_27] : memref<2x1xf32, #tpu.memory_space<vmem>>, vector<2x1xf32>
      tpu.vector_store %arg8[%c0_26, %c0_27], %31 {strides = array<i32>} : memref<2x1xf32, #tpu.memory_space<vmem>>, vector<2x1xf32>,
      %cst_28 = arith.constant 0.000000e+00 : f32
      %33 = vector.broadcast %cst_28 : f32 to vector<2x1xf32>
      %c0_29 = arith.constant 0 : index
      %c0_30 = arith.constant 0 : index
      %34 = vector.load %arg9[%c0_29, %c0_30] : memref<2x1xf32, #tpu.memory_space<vmem>>, vector<2x1xf32>
      tpu.vector_store %arg9[%c0_29, %c0_30], %33 {strides = array<i32>} : memref<2x1xf32, #tpu.memory_space<vmem>>, vector<2x1xf32>,
    } else {
    }
    %c0 = arith.constant 0 : index
    %c0_1 = arith.constant 0 : index
    %3 = vector.load %arg3[%c0, %c0_1] : memref<2x8xf32, #tpu.memory_space<vmem>>, vector<2x8xf32>
    %cst = arith.constant 0.000000e+00 : f32
    %4 = vector.broadcast %cst : f32 to vector<2x8xf32>
    %5 = arith.cmpf one, %3, %4 : vector<2x8xf32>
    %6 = arith.extui %5 : vector<2x8xi1> to vector<2x8xi32>
    %7 = arith.sitofp %6 : vector<2x8xi32> to vector<2x8xf32>
    %c0_2 = arith.constant 0 : index
    %c0_3 = arith.constant 0 : index
    %c0_4 = arith.constant 0 : index
    %8 = vector.load %arg2[%c0_2, %c0_3, %c0_4] : memref<2x8x32xf32, #tpu.memory_space<vmem>>, vector<2x8x32xf32>
    %c0_5 = arith.constant 0 : index
    %c0_6 = arith.constant 0 : index
    %9 = vector.load %arg7[%c0_5, %c0_6] : memref<2x32xf32, #tpu.memory_space<vmem>>, vector<2x32xf32>
    %10 = vector.shape_cast %7 : vector<2x8xf32> to vector<2x8x1xf32>
    %11 = vector.broadcast %10 : vector<2x8x1xf32> to vector<2x8x32xf32>
    %12 = arith.mulf %8, %11 : vector<2x8x32xf32>
    %cst_7 = arith.constant dense<0.000000e+00> : vector<2x32xf32>
    %13 = vector.multi_reduction <add>, %12, %cst_7 [1] : vector<2x8x32xf32> to vector<2x32xf32>
    %14 = arith.addf %9, %13 : vector<2x32xf32>
    %c0_8 = arith.constant 0 : index
    %c0_9 = arith.constant 0 : index
    %15 = vector.load %arg7[%c0_8, %c0_9] : memref<2x32xf32, #tpu.memory_space<vmem>>, vector<2x32xf32>
    tpu.vector_store %arg7[%c0_8, %c0_9], %14 {strides = array<i32>} : memref<2x32xf32, #tpu.memory_space<vmem>>, vector<2x32xf32>,
    %c0_10 = arith.constant 0 : index
    %c0_11 = arith.constant 0 : index
    %16 = vector.load %arg8[%c0_10, %c0_11] : memref<2x1xf32, #tpu.memory_space<vmem>>, vector<2x1xf32>
    %cst_12 = arith.constant dense<0.000000e+00> : vector<2xf32>
    %17 = vector.multi_reduction <add>, %7, %cst_12 [1] : vector<2x8xf32> to vector<2xf32>
    %18 = vector.shape_cast %17 : vector<2xf32> to vector<2x1xf32>
    %19 = arith.addf %16, %18 : vector<2x1xf32>
    %c0_13 = arith.constant 0 : index
    %c0_14 = arith.constant 0 : index
    %20 = vector.load %arg8[%c0_13, %c0_14] : memref<2x1xf32, #tpu.memory_space<vmem>>, vector<2x1xf32>
    tpu.vector_store %arg8[%c0_13, %c0_14], %19 {strides = array<i32>} : memref<2x1xf32, #tpu.memory_space<vmem>>, vector<2x1xf32>,
    %c0_15 = arith.constant 0 : index
    %c0_16 = arith.constant 0 : index
    %21 = vector.load %arg9[%c0_15, %c0_16] : memref<2x1xf32, #tpu.memory_space<vmem>>, vector<2x1xf32>
    %cst_17 = arith.constant dense<0.000000e+00> : vector<2xf32>
    %22 = vector.multi_reduction <add>, %3, %cst_17 [1] : vector<2x8xf32> to vector<2xf32>
    %23 = vector.shape_cast %22 : vector<2xf32> to vector<2x1xf32>
    %24 = arith.addf %21, %23 : vector<2x1xf32>
    %c0_18 = arith.constant 0 : index
    %c0_19 = arith.constant 0 : index
    %25 = vector.load %arg9[%c0_18, %c0_19] : memref<2x1xf32, #tpu.memory_space<vmem>>, vector<2x1xf32>
    tpu.vector_store %arg9[%c0_18, %c0_19], %24 {strides = array<i32>} : memref<2x1xf32, #tpu.memory_space<vmem>>, vector<2x1xf32>,
    %c0_i32_20 = arith.constant 0 : i32
    %26 = arith.cmpi eq, %arg1, %c0_i32_20 : i32
    %27 = arith.extui %26 : i1 to i32
    %c0_i32_21 = arith.constant 0 : i32
    %28 = arith.cmpi ne, %27, %c0_i32_21 : i32
    scf.if %28 {
      %c0_22 = arith.constant 0 : index
      %c0_23 = arith.constant 0 : index
      %29 = vector.load %arg7[%c0_22, %c0_23] : memref<2x32xf32, #tpu.memory_space<vmem>>, vector<2x32xf32>
      %c0_24 = arith.constant 0 : index
      %c0_25 = arith.constant 0 : index
      %30 = vector.load %arg4[%c0_24, %c0_25] : memref<32x32xf32, #tpu.memory_space<vmem>>, vector<32x32xf32>
      %cst_26 = arith.constant dense<0.000000e+00> : vector<2x32xf32>
      %31 = tpu.matmul %29, %30, %cst_26 {dimension_numbers = #tpu.dot_dimension_numbers<[1], [1], [0], [0], [0, 0, 1, 0], [], []>} : vector<2x32xf32>, vector<32x32xf32>, vector<2x32xf32> -> vector<2x32xf32>
      %c0_27 = arith.constant 0 : index
      %c0_28 = arith.constant 0 : index
      %32 = vector.load %arg9[%c0_27, %c0_28] : memref<2x1xf32, #tpu.memory_space<vmem>>, vector<2x1xf32>
      %cst_29 = arith.constant 1.000000e+00 : f32
      %33 = vector.broadcast %cst_29 : f32 to vector<2x1xf32>
      %34 = arith.divf %33, %32 : vector<2x1xf32>
      %c0_30 = arith.constant 0 : index
      %c0_31 = arith.constant 0 : index
      %35 = vector.load %arg8[%c0_30, %c0_31] : memref<2x1xf32, #tpu.memory_space<vmem>>, vector<2x1xf32>
      %c0_32 = arith.constant 0 : index
      %c0_33 = arith.constant 0 : index
      %36 = vector.load %arg5[%c0_32, %c0_33] : memref<1x32xf32, #tpu.memory_space<vmem>>, vector<1x32xf32>
      %37 = vector.broadcast %35 : vector<2x1xf32> to vector<2x32xf32>
      %38 = vector.broadcast %36 : vector<1x32xf32> to vector<2x32xf32>
      %39 = arith.mulf %37, %38 : vector<2x32xf32>
      %40 = arith.addf %31, %39 : vector<2x32xf32>
      %41 = vector.broadcast %34 : vector<2x1xf32> to vector<2x32xf32>
      %42 = arith.mulf %40, %41 : vector<2x32xf32>
      %43 = arith.negf %42 : vector<2x32xf32>
      %44 = math.exp %43 : vector<2x32xf32>
      %cst_34 = arith.constant 1.000000e+00 : f32
      %45 = vector.broadcast %cst_34 : f32 to vector<2x32xf32>
      %46 = arith.addf %45, %44 : vector<2x32xf32>
      %47 = arith.divf %45, %46 : vector<2x32xf32>
      %c0_35 = arith.constant 0 : index
      %c0_36 = arith.constant 0 : index
      %48 = vector.load %arg6[%c0_35, %c0_36] : memref<2x32xf32, #tpu.memory_space<vmem>>, vector<2x32xf32>
      tpu.vector_store %arg6[%c0_35, %c0_36], %47 {strides = array<i32>} : memref<2x32xf32, #tpu.memory_space<vmem>>, vector<2x32xf32>,
    } else {
    }
    return
  }
  func.func @transform_0(%arg0: i32, %arg1: i32) -> (i32, i32, i32) {
    %c0_i32 = arith.constant 0 : i32
    %c0_i32_0 = arith.constant 0 : i32
    return %arg0, %arg1, %c0_i32 : i32, i32, i32
  }
  func.func @transform_1(%arg0: i32, %arg1: i32) -> (i32, i32) {
    %c0_i32 = arith.constant 0 : i32
    return %arg0, %arg1 : i32, i32
  }
  func.func @transform_2(%arg0: i32, %arg1: i32) -> (i32, i32) {
    %c0_i32 = arith.constant 0 : i32
    %c0_i32_0 = arith.constant 0 : i32
    %c0_i32_1 = arith.constant 0 : i32
    return %c0_i32, %c0_i32_0 : i32, i32
  }
  func.func @transform_3(%arg0: i32, %arg1: i32) -> (i32, i32) {
    %c0_i32 = arith.constant 0 : i32
    %c0_i32_0 = arith.constant 0 : i32
    %c0_i32_1 = arith.constant 0 : i32
    return %c0_i32, %c0_i32_0 : i32, i32
  }
  func.func @transform_4(%arg0: i32, %arg1: i32) -> (i32, i32) {
    %c0_i32 = arith.constant 0 : i32
    %c0_i32_0 = arith.constant 0 : i32
    return %arg0, %c0_i32 : i32, i32
  }
}

</mosaic_0001>

<bundles_post_ra>
// kernel: contrastive_head_avg.1
= control target key start
LH: loop header
LB: loop body
LE: loop exit
PB: predicated region body
PF: predicated region fallthrough
CT: control target
= control target key end

     0   :  { %9 = vsyncpa [#allocation6], 0  ;;  %s441_s0 = inlined_call_operand.hbm [shape: f32[2,8,32], index: 0, kind: input, shape index: {}]   ;;  %s442_s1 = inlined_call_operand.hbm [shape: f32[2,8], index: 1, kind: input, shape index: {}]   ;;  %s443_s2 = inlined_call_operand.hbm [shape: f32[32,32], index: 2, kind: input, shape index: {}]   ;;  %s444_s3 = inlined_call_operand.vmem [shape: f32[1,32], index: 3, kind: input, shape index: {}]   ;;  %s445_s4 = inlined_call_operand.hbm [shape: f32[2,32], index: 4, kind: output, shape index: {}]  }
   0x1   :  { %10 = vsyncpa [#allocation9], 0  ;;  %s30_s17 = sshll.u32 %s442_s1, 4  ;;  %s31_s17 = int_to_ptr.hbm [resolvable:$true] %s30_s17 }
   0x2   :  { %11 = vsyncpa [#allocation7], 0  ;;  %s379_s18 = smov [#allocation8]   ;;  %s16_s22 = sshll.u32 %s441_s0, 4  ;;  %s17_s22 = int_to_ptr.hbm [resolvable:$true] %s16_s22 }
   0x3   :  { %s32_s19 = sshll.u32 %s379_s18, 4  ;;  %s380_s23 = smov [#allocation5]   ;;  %s33_s19 = int_to_ptr.vmem [resolvable:$true] %s32_s19 }
   0x4   :  { %35 = dma.hbm_to_vmem [thread:$0]  %s31_s17, 32, %s33_s19, [#allocation9]  }
   0x5   :  { %s18_s24 = sshll.u32 %s380_s23, 4  ;;  %s381_s25 = smov 128   ;;  %s19_s24 = int_to_ptr.vmem [resolvable:$true] %s18_s24 }
   0x6   :  { %s382_s26 = smov 8   ;;  %s40_s1 = sshll.u32 %s443_s2, 4  ;;  %s41_s1 = int_to_ptr.hbm [resolvable:$true] %s40_s1 }
   0x7   :  { %24 = dma.hbm_to_vmem [thread:$0]  %s17_s22, 256, %s19_s24, [#allocation6], %s381_s25, %s381_s25, %s382_s26  }
   0x8   :  { %s383_s29 = smov [#allocation10]  }
   0x9   :  { %s42_s30 = sshll.u32 %s383_s29, 4  ;;  %s43_s30 = int_to_ptr.vmem [resolvable:$true] %s42_s30 }
   0xa   :  { %48 = dma.hbm_to_vmem [thread:$0]  %s41_s1, 512, %s43_s30, [#allocation9], %s381_s25, %s381_s25, %s382_s26  }
   0xb   :  { %373 = dma.done.wait [#allocation6], 256  }
   0xc   :  { %374 = vsyncadd [#allocation6], 4294967040 }
   0xd   :  { %375 = dma.done.wait [#allocation9], 544  }
   0xe   :  { %376 = vsyncadd [#allocation9], 4294966752  ;;  %v80_v0 = vlaneseq  ;;  %vm67_vm0 = vcmask 254976   ;;  %vm69_vm1 = vcmask 1024   ;;  %v384_v1 = vmov 0.0   ;;  %v139_v10 = vld [vmem:[#allocation10 + $0x18] sm:$0xff] }
   0xf   :  { %68 = vst.msk [vmem:[#allocation2] sm:$0x3] %vm67_vm0, %v384_v1  ;;  %v72_v3 = vld [vmem:[#allocation8] sm:$0x3]  ;;  %vm119_vm2 = vcmask 58368   ;;  %vm95_vm4 = vcmask 261120  }
  0x10   :  { %v81_v2 = vshrl.u32 %v80_v0, 7  ;;  %70 = vst.msk [vmem:[#allocation3] sm:$0x3] %vm69_vm1, %v384_v1  ;;  %vm73_vm3 = vcmp.ne.f32.partialorder %v72_v3, 0.0  ;;  %v127_v9 = vsel %vm119_vm2, %v72_v3, 0.0  ;;  %247 = vmatpush.xpose.msk.msra.mxu0 %vm95_vm4, %v139_v10  ;;  %v138_v11 = vld [vmem:[#allocation10 + $0x10] sm:$0xff] }
  0x11   :  { %71 = vst.msk [vmem:[#allocation4] sm:$0x3] %vm69_vm1, %v384_v1  ;;  %v246_v4 = vsel %vm73_vm3, 1.0, %v384_v1  ;;  %v137_v12 = vld [vmem:[#allocation10 + $0x8] sm:$0xff]  ;;  %v136_v13 = vld [vmem:[#allocation10] sm:$0xff]  ;;  %v385_v16 = vmov 0  }
  0x12   :  { %261 = vset.pattern.permute.xlu0 %v81_v2  ;;  %v79_v5 = vperm.slane %v246_v4, 0  ;;  %v86_v6 = vperm.slane %v246_v4, 1  ;;  %v120_v7 = vsel %vm119_vm2, %v246_v4, 0.0  ;;  %267 = vset.pattern.permute.xlu1 %v385_v16  ;;  %v76_v18 = vld [vmem:[#allocation5] sm:$0xff]  ;;  %v77_v19 = vld [vmem:[#allocation5 + $0x8] sm:$0xff]  ;;  %vm112_vm5 = vcmask 1041409  }
  0x13   :  { %121 = vadd.xlane.f32.xlu1 %v120_v7  ;;  %268 = vset.pattern.permute.xlu2 %v385_v16  ;;  %v270_v58 = vld [vmem:[%s444_s3] ss:$0 sm:$0xff]  ;;  %s386_s5 = smov [#allocation11]   ;;  %s235_s8 = sshll.u32 %s445_s4, 4  ;;  %s236_s8 = int_to_ptr.hbm [resolvable:$true] %s235_s8 }
  0x14   :  { %v262_v8 = vpack.i.bf16 %v86_v6, %v79_v5  ;;  %248 = vmatpush.xpose.msk.msra.mxu0 %vm95_vm4, %v138_v11  ;;  %s233_s3 = sshll.u32 %s386_s5, 4  ;;  %s234_s3 = int_to_ptr.vmem [resolvable:$true] %s233_s3 }
  0x16   :  { %v78_v39 = vld [vmem:[#allocation2] sm:$0x3] }
  0x17   :  { %v118_v14 = vld [vmem:[#allocation3] sm:$0x3] }
  0x18   :  { %249 = vmatpush.xpose.msk.msra.mxu0 %vm95_vm4, %v137_v12  ;;  %v126_v44 = vld [vmem:[#allocation4] sm:$0x3] }
  0x1a   :  { %263 = vperm.xlu0 %261, %v262_v8  }
  0x1c   :  { %250 = vmatpush.xpose.msk.msra.mxu0 %vm95_vm4, %v136_v13 }
  0x22   :  { %269 = vset.pattern.permute.xlu0 %v385_v16 }
  0x44   :  { %128 = vadd.xlane.f32.xlu0 %v127_v9 }
  0x86   :  { %v122_v15 = vpop.xlane.xlu1 %121 }
  0x87   :  { %v123_v17 = vadd.f32 %v122_v15, %v118_v14 }
  0x89   :  { %125 = vst.msk [vmem:[#allocation3] sm:$0x3] %vm69_vm1, %v123_v17 }
  0x8c   :  { %v264_v20 = vpop.permute.xlu0 %263 }
  0x8d   :  { %v266_v21 = vunpack.i.h.bf16 %v264_v20  ;;  %v265_v22 = vunpack.i.l.bf16 %v264_v20 }
  0x8f   :  { %v94_v23 = vmul.f32 %v266_v21, %v77_v19  ;;  %v93_v24 = vmul.f32 %v265_v22, %v76_v18 }
  0x90   :  { %v156_v31 = vld [vmem:[#allocation3] sm:$0x3] }
  0x91   :  { %v103_v25 = vsel %vm95_vm4, %v94_v23, 0.0  ;;  %v96_v26 = vsel %vm95_vm4, %v93_v24, 0.0  ;;  %160 = vperm.xlu1 %267, %v156_v31  }
  0x92   :  { %v104_v27 = vrot.slane %v103_v25, 4  ;;  %v97_v28 = vrot.slane %v96_v26, 4 }
  0x94   :  { %v105_v29 = vadd.f32 %v104_v27, %v103_v25  ;;  %v98_v30 = vadd.f32 %v97_v28, %v96_v26 }
  0x96   :  { %v106_v32 = vrot.slane %v105_v29, 2  ;;  %v99_v33 = vrot.slane %v98_v30, 2 }
  0x98   :  { %v107_v34 = vadd.f32 %v106_v32, %v105_v29  ;;  %v100_v35 = vadd.f32 %v99_v33, %v98_v30 }
  0x9a   :  { %v108_v36 = vrot.slane %v107_v34, 1  ;;  %v101_v37 = vrot.slane %v100_v35, 1 }
  0x9c   :  { %v109_v38 = vadd.f32 %v108_v36, %v107_v34  ;;  %v102_v40 = vadd.f32 %v101_v37, %v100_v35 }
  0x9e   :  { %v113_v41 = vsel %vm112_vm5, %v109_v38, %v102_v40 }
  0x9f   :  { %v115_v42 = vadd.f32 %v113_v41, %v78_v39 }
  0xa1   :  { %117 = vst.msk [vmem:[#allocation2] sm:$0x3] %vm67_vm0, %v115_v42 }
  0xa8   :  { %v135_v43 = vld [vmem:[#allocation2] sm:$0x3] }
  0xa9   :  { %251 = vmatmul.msk.f32.vlgmr.msra.gmra.mxu0 %vm95_vm4, %v135_v43 }
  0xb7   :  { %v129_v45 = vpop.xlane.xlu0 %128 }
  0xb8   :  { %v130_v46 = vadd.f32 %v129_v45, %v126_v44 }
  0xba   :  { %131 = vst.msk [vmem:[#allocation4] sm:$0x3] %vm69_vm1, %v130_v46 }
  0xc1   :  { %v140_v47 = vld [vmem:[#allocation4] sm:$0x3] }
  0xc2   :  { %271 = vrcp.f32 %v140_v47  ;;  %v152_v51 = vand.u32 2147483648, %v140_v47  ;;  %v150_v53 = vand.u32 2147483647, %v140_v47  ;;  %vm146_vm7 = vweird.f32 %v140_v47 }
  0xc4   :  { %v153_v55 = vor.u32 1.1754944e-38, %v152_v51  ;;  %vm151_vm9 = vcmp.eq.f32.partialorder %v150_v53, 8.507059e+37 }
  0xc8   :  { %v272_v48 = vpop.eup %271 }
  0xc9   :  { %v142_v49 = vmul.f32 %v272_v48, %v140_v47  ;;  %vm147_vm6 = vweird.f32 %v272_v48 }
  0xca   :  { %vm148_vm8 = vmor %vm146_vm7, %vm147_vm6 }
  0xcb   :  { %v143_v50 = vsub.f32 1.0, %v142_v49 }
  0xcd   :  { %v144_v52 = vmul.f32 %v272_v48, %v143_v50 }
  0xcf   :  { %v145_v54 = vadd.f32 %v272_v48, %v144_v52 }
  0xd1   :  { %v149_v56 = vsel %vm148_vm8, %v272_v48, %v145_v54 }
  0xd2   :  { %v154_v57 = vsel %vm151_vm9, %v153_v55, %v149_v56 }
  0xd3   :  { %204 = vperm.xlu2 %268, %v154_v57  }
 0x103   :  { %v161_v59 = vpop.permute.xlu1 %160 }
 0x104   :  { %v166_v60 = vmul.f32 %v270_v58, %v161_v59 }
 0x126   :  { %v199_v61 = vpop.f32.mrf.mxu0 }
 0x127   :  { %v200_v62 = vadd.f32 %v199_v61, %v166_v60 }
 0x12d   :  { %v205_v63 = vpop.permute.xlu2 %204 }
 0x12e   :  { %v207_v0 = vmul.f32 %v205_v63, %v200_v62 }
 0x130   :  { %v252_v1 = vmul.f32 -1.442695, %v207_v0 }
 0x132   :  { %273 = vpow2.f32 %v252_v1 }
 0x138   :  { %v274_v2 = vpop.eup %273 }
 0x139   :  { %v211_v3 = vadd.f32 1.0, %v274_v2 }
 0x13b   :  { %275 = vrcp.f32 %v211_v3  ;;  %v223_v7 = vand.u32 2147483648, %v211_v3  ;;  %v221_v9 = vand.u32 2147483647, %v211_v3  ;;  %vm217_vm11 = vweird.f32 %v211_v3 }
 0x13d   :  { %v224_v11 = vor.u32 1.1754944e-38, %v223_v7  ;;  %vm222_vm13 = vcmp.eq.f32.partialorder %v221_v9, 8.507059e+37 }
 0x141   :  { %v276_v4 = vpop.eup %275 }
 0x142   :  { %v213_v5 = vmul.f32 %v276_v4, %v211_v3  ;;  %vm218_vm10 = vweird.f32 %v276_v4 }
 0x143   :  { %vm219_vm12 = vmor %vm217_vm11, %vm218_vm10 }
 0x144   :  { %v214_v6 = vsub.f32 1.0, %v213_v5 }
 0x146   :  { %v215_v8 = vmul.f32 %v276_v4, %v214_v6 }
 0x148   :  { %v216_v10 = vadd.f32 %v276_v4, %v215_v8 }
 0x14a   :  { %v220_v12 = vsel %vm219_vm12, %v276_v4, %v216_v10 }
 0x14b   :  { %v225_v13 = vsel %vm222_vm13, %v224_v11, %v220_v12 }
 0x14c   :  { %227 = vst.msk [vmem:[#allocation11] sm:$0x3] %vm67_vm0, %v225_v13 }
 0x14d   :  { %238 = dma.vmem_to_hbm [thread:$0]  %s234_s3, 32, %s236_s8, [#allocation7]  }
 0x14e   :  { %377 = dma.done.wait [#allocation7], 32  }
 0x14f   :  { %378 = vsyncadd [#allocation7], 4294967264 }
 0x150   :  { %243 = vsyncpa [#allocation6], 1 }
 0x151   :  { %244 = vsyncpa [#allocation9], 1 }
 0x152   :  { %245 = vsyncpa [#allocation7], 1 }

</bundles_post_ra>
